<compile_context>
chip_gen: v7x
topology: tpu7x:2x2x1
jax: 0.10.0
libtpu: 0.0.40
codegen_flags: <defaults>
</compile_context>

<pallas_src>
import jax
import jax.numpy as jnp
from jax.experimental import pallas as pl
from jax.experimental.pallas import tpu as pltpu

_LANE = 128


def _round_up(x, m):
    return (x + m - 1) // m * m


def _actor_kernel(x_ref, w1_ref, b1_ref, w2_ref, b2_ref, w3_ref, b3_ref, o_ref):
    # Layer 1: bf16 matmul on the MXU, f32 accumulate, f32 bias + tanh.
    h = jnp.dot(x_ref[...], w1_ref[...], preferred_element_type=jnp.float32)
    h = jnp.tanh(h + b1_ref[...]).astype(jnp.bfloat16)
    # Layer 2.
    h = jnp.dot(h, w2_ref[...], preferred_element_type=jnp.float32)
    h = jnp.tanh(h + b2_ref[...]).astype(jnp.bfloat16)
    # Output layer (linear, no activation).
    out = jnp.dot(h, w3_ref[...], preferred_element_type=jnp.float32) + b3_ref[...]
    o_ref[...] = out.astype(o_ref.dtype)


def general_actor_forward(obs, params, *, block_batch=256):
    """Pallas implementation of GeneralActor.forward (non-recurrent MLP path).

    Returns (action_mean, hidden=None) to match the PyTorch signature.
    Weight padding / bf16 casting below would normally be hoisted out and done
    once; it is inlined here to keep the script self-contained.
    """
    w1, b1, w2, b2, w3, b3 = params
    batch, ob_dim = obs.shape
    hidden_dim = w1.shape[1]
    action_dim = w3.shape[1]

    # Lane-pad hidden / action dims to multiples of 128 (exact: padded hidden
    # units see zero weights and zero bias -> tanh(0)=0 -> contribute nothing).
    h_pad = _round_up(hidden_dim, _LANE)
    a_pad = _round_up(action_dim, _LANE)

    bf16 = jnp.bfloat16
    f32 = jnp.float32
    w1p = jnp.zeros((ob_dim, h_pad), bf16).at[:, :hidden_dim].set(w1.astype(bf16))
    b1p = jnp.zeros((1, h_pad), f32).at[:, :hidden_dim].set(b1.astype(f32))
    w2p = jnp.zeros((h_pad, h_pad), bf16).at[:hidden_dim, :hidden_dim].set(w2.astype(bf16))
    b2p = jnp.zeros((1, h_pad), f32).at[:, :hidden_dim].set(b2.astype(f32))
    w3p = jnp.zeros((h_pad, a_pad), bf16).at[:hidden_dim, :action_dim].set(w3.astype(bf16))
    b3p = jnp.zeros((1, a_pad), f32).at[:, :action_dim].set(b3.astype(f32))

    # Batch tiling: pad batch up to a whole number of tiles.
    tb = min(block_batch, _round_up(batch, 8))
    batch_pad = _round_up(batch, tb)
    obs_p = jnp.zeros((batch_pad, ob_dim), bf16).at[:batch].set(obs.astype(bf16))
    grid = (batch_pad // tb,)

    def const_spec(shape):
        # Weights / biases: same block every grid step -> stay resident in VMEM.
        return pl.BlockSpec(shape, lambda i: (0, 0))

    out = pl.pallas_call(
        _actor_kernel,
        out_shape=jax.ShapeDtypeStruct((batch_pad, a_pad), jnp.float32),
        grid=grid,
        in_specs=[
            pl.BlockSpec((tb, ob_dim), lambda i: (i, 0)),   # obs, tiled on batch
            const_spec(w1p.shape),
            const_spec(b1p.shape),
            const_spec(w2p.shape),
            const_spec(b2p.shape),
            const_spec(w3p.shape),
            const_spec(b3p.shape),
        ],
        out_specs=pl.BlockSpec((tb, a_pad), lambda i: (i, 0)),
        compiler_params=pltpu.CompilerParams(
            dimension_semantics=("parallel",),  # batch tiles are independent
        ),
    )(obs_p, w1p, b1p, w2p, b2p, w3p, b3p)

    # Strip batch padding and lane padding.
    action_mean = out[:batch, :action_dim]
    return action_mean, None  # hidden is None for the non-recurrent MLP path


def make_params(key, ob_dim, hidden_dim, action_dim):
    """Deterministic synthetic parameters (stand-in for MLP + Gaussian state_dict)."""
    k1, k2, k3 = jax.random.split(key, 3)

    def linear(k, fan_in, fan_out):
        # Match torch.nn.Linear default init scale (uniform +/- 1/sqrt(fan_in)).
        bound = 1.0 / jnp.sqrt(fan_in)
        kw, kb = jax.random.split(k)
        w = jax.random.uniform(kw, (fan_in, fan_out), jnp.float32, -bound, bound)
        b = jax.random.uniform(kb, (1, fan_out), jnp.float32, -bound, bound)
        return w, b

    w1, b1 = linear(k1, ob_dim, hidden_dim)
    w2, b2 = linear(k2, hidden_dim, hidden_dim)
    w3, b3 = linear(k3, hidden_dim, action_dim)
    return (w1, b1, w2, b2, w3, b3)


def reference_forward(obs, params):
    """Pure-JAX f32 reference for correctness checking."""
    w1, b1, w2, b2, w3, b3 = params
    h = jnp.tanh(obs @ w1 + b1)
    h = jnp.tanh(h @ w2 + b2)
    return h @ w3 + b3


if __name__ == "__main__":
    key = jax.random.PRNGKey(0)
    k_obs, k_params = jax.random.split(key)

    # Small shapes consistent with the module; batch > tile so the grid has
    # multiple steps (and a non-multiple to exercise batch padding).
    batch, ob_dim, hidden_dim, action_dim = 384, 32, 64, 8
    obs = jax.random.normal(k_obs, (batch, ob_dim), jnp.float32)
    params = make_params(k_params, ob_dim, hidden_dim, action_dim)

    action, hidden = general_actor_forward(obs, params, block_batch=128)
    action = jax.block_until_ready(action)

    ref = reference_forward(obs, params)
    assert hidden is None
    assert action.shape == (batch, action_dim)
    # bf16 matmul inputs with f32 accumulation: loosen tolerance vs f32 reference.
    assert jnp.allclose(action, ref, atol=2e-2, rtol=2e-2), (
        float(jnp.max(jnp.abs(action - ref)))
    )

    # TODO(synk): stochastic path (act_stochastic: Gaussian sampling + log_prob) and
    # recurrent RMlp path are not exercised by the deterministic forward() and are
    # left out of the kernel.
    print("KERNEL_OK")
</pallas_src>

<mosaic_0001>
module attributes {stable_mosaic.version = 11 : i64} {
  func.func @_actor_kernel(%arg0: i32, %arg1: memref<128x32xbf16, #tpu.memory_space<vmem>>, %arg2: memref<32x128xbf16, #tpu.memory_space<vmem>>, %arg3: memref<1x128xf32, #tpu.memory_space<vmem>>, %arg4: memref<128x128xbf16, #tpu.memory_space<vmem>>, %arg5: memref<1x128xf32, #tpu.memory_space<vmem>>, %arg6: memref<128x128xbf16, #tpu.memory_space<vmem>>, %arg7: memref<1x128xf32, #tpu.memory_space<vmem>>, %arg8: memref<128x128xf32, #tpu.memory_space<vmem>>) attributes {dimension_semantics = [#tpu.dimension_semantics<parallel>], iteration_bounds = array<i64: 3>, scalar_prefetch = 0 : i64, scratch_operands = 0 : i64, tpu.core_type = #tpu.core_type<tc>, window_params = [{transform_indices = @transform_0, window_bounds = array<i64: 128, 32>}, {pipeline_mode = #tpu.pipeline_mode<synchronous>, transform_indices = @transform_1, window_bounds = array<i64: 32, 128>}, {pipeline_mode = #tpu.pipeline_mode<synchronous>, transform_indices = @transform_2, window_bounds = array<i64: 1, 128>}, {pipeline_mode = #tpu.pipeline_mode<synchronous>, transform_indices = @transform_3, window_bounds = array<i64: 128, 128>}, {pipeline_mode = #tpu.pipeline_mode<synchronous>, transform_indices = @transform_4, window_bounds = array<i64: 1, 128>}, {pipeline_mode = #tpu.pipeline_mode<synchronous>, transform_indices = @transform_5, window_bounds = array<i64: 128, 128>}, {pipeline_mode = #tpu.pipeline_mode<synchronous>, transform_indices = @transform_6, window_bounds = array<i64: 1, 128>}, {transform_indices = @transform_7, window_bounds = array<i64: 128, 128>}]} {
    %c0 = arith.constant 0 : index
    %c0_0 = arith.constant 0 : index
    %0 = vector.load %arg1[%c0, %c0_0] : memref<128x32xbf16, #tpu.memory_space<vmem>>, vector<128x32xbf16>
    %c0_1 = arith.constant 0 : index
    %c0_2 = arith.constant 0 : index
    %1 = vector.load %arg2[%c0_1, %c0_2] : memref<32x128xbf16, #tpu.memory_space<vmem>>, vector<32x128xbf16>
    %cst = arith.constant dense<0.000000e+00> : vector<128x128xf32>
    %2 = tpu.matmul %0, %1, %cst {dimension_numbers = #tpu.dot_dimension_numbers<[1], [0], [0], [1], [0, 0, 1, 1], [], []>} : vector<128x32xbf16>, vector<32x128xbf16>, vector<128x128xf32> -> vector<128x128xf32>
    %c0_3 = arith.constant 0 : index
    %c0_4 = arith.constant 0 : index
    %3 = vector.load %arg3[%c0_3, %c0_4] : memref<1x128xf32, #tpu.memory_space<vmem>>, vector<1x128xf32>
    %4 = vector.broadcast %3 : vector<1x128xf32> to vector<128x128xf32>
    %5 = arith.addf %2, %4 : vector<128x128xf32>
    %6 = math.tanh %5 : vector<128x128xf32>
    %7 = arith.truncf %6 : vector<128x128xf32> to vector<128x128xbf16>
    %c0_5 = arith.constant 0 : index
    %c0_6 = arith.constant 0 : index
    %8 = vector.load %arg4[%c0_5, %c0_6] : memref<128x128xbf16, #tpu.memory_space<vmem>>, vector<128x128xbf16>
    %cst_7 = arith.constant dense<0.000000e+00> : vector<128x128xf32>
    %9 = tpu.matmul %7, %8, %cst_7 {dimension_numbers = #tpu.dot_dimension_numbers<[1], [0], [0], [1], [0, 0, 1, 1], [], []>} : vector<128x128xbf16>, vector<128x128xbf16>, vector<128x128xf32> -> vector<128x128xf32>
    %c0_8 = arith.constant 0 : index
    %c0_9 = arith.constant 0 : index
    %10 = vector.load %arg5[%c0_8, %c0_9] : memref<1x128xf32, #tpu.memory_space<vmem>>, vector<1x128xf32>
    %11 = vector.broadcast %10 : vector<1x128xf32> to vector<128x128xf32>
    %12 = arith.addf %9, %11 : vector<128x128xf32>
    %13 = math.tanh %12 : vector<128x128xf32>
    %14 = arith.truncf %13 : vector<128x128xf32> to vector<128x128xbf16>
    %c0_10 = arith.constant 0 : index
    %c0_11 = arith.constant 0 : index
    %15 = vector.load %arg6[%c0_10, %c0_11] : memref<128x128xbf16, #tpu.memory_space<vmem>>, vector<128x128xbf16>
    %cst_12 = arith.constant dense<0.000000e+00> : vector<128x128xf32>
    %16 = tpu.matmul %14, %15, %cst_12 {dimension_numbers = #tpu.dot_dimension_numbers<[1], [0], [0], [1], [0, 0, 1, 1], [], []>} : vector<128x128xbf16>, vector<128x128xbf16>, vector<128x128xf32> -> vector<128x128xf32>
    %c0_13 = arith.constant 0 : index
    %c0_14 = arith.constant 0 : index
    %17 = vector.load %arg7[%c0_13, %c0_14] : memref<1x128xf32, #tpu.memory_space<vmem>>, vector<1x128xf32>
    %18 = vector.broadcast %17 : vector<1x128xf32> to vector<128x128xf32>
    %19 = arith.addf %16, %18 : vector<128x128xf32>
    %c0_15 = arith.constant 0 : index
    %c0_16 = arith.constant 0 : index
    %20 = vector.load %arg8[%c0_15, %c0_16] : memref<128x128xf32, #tpu.memory_space<vmem>>, vector<128x128xf32>
    tpu.vector_store %arg8[%c0_15, %c0_16], %19 {strides = array<i32>} : memref<128x128xf32, #tpu.memory_space<vmem>>, vector<128x128xf32>,
    return
  }
  func.func @transform_0(%arg0: i32) -> (i32, i32) {
    %c0_i32 = arith.constant 0 : i32
    %c0_i32_0 = arith.constant 0 : i32
    return %arg0, %c0_i32 : i32, i32
  }
  func.func @transform_1(%arg0: i32) -> (i32, i32) {
    %c0_i32 = arith.constant 0 : i32
    %c0_i32_0 = arith.constant 0 : i32
    %c0_i32_1 = arith.constant 0 : i32
    return %c0_i32, %c0_i32_0 : i32, i32
  }
  func.func @transform_2(%arg0: i32) -> (i32, i32) {
    %c0_i32 = arith.constant 0 : i32
    %c0_i32_0 = arith.constant 0 : i32
    %c0_i32_1 = arith.constant 0 : i32
    return %c0_i32, %c0_i32_0 : i32, i32
  }
  func.func @transform_3(%arg0: i32) -> (i32, i32) {
    %c0_i32 = arith.constant 0 : i32
    %c0_i32_0 = arith.constant 0 : i32
    %c0_i32_1 = arith.constant 0 : i32
    return %c0_i32, %c0_i32_0 : i32, i32
  }
  func.func @transform_4(%arg0: i32) -> (i32, i32) {
    %c0_i32 = arith.constant 0 : i32
    %c0_i32_0 = arith.constant 0 : i32
    %c0_i32_1 = arith.constant 0 : i32
    return %c0_i32, %c0_i32_0 : i32, i32
  }
  func.func @transform_5(%arg0: i32) -> (i32, i32) {
    %c0_i32 = arith.constant 0 : i32
    %c0_i32_0 = arith.constant 0 : i32
    %c0_i32_1 = arith.constant 0 : i32
    return %c0_i32, %c0_i32_0 : i32, i32
  }
  func.func @transform_6(%arg0: i32) -> (i32, i32) {
    %c0_i32 = arith.constant 0 : i32
    %c0_i32_0 = arith.constant 0 : i32
    %c0_i32_1 = arith.constant 0 : i32
    return %c0_i32, %c0_i32_0 : i32, i32
  }
  func.func @transform_7(%arg0: i32) -> (i32, i32) {
    %c0_i32 = arith.constant 0 : i32
    %c0_i32_0 = arith.constant 0 : i32
    return %arg0, %c0_i32 : i32, i32
  }
}

</mosaic_0001>

<bundles_post_ra>
// kernel: tpu_custom_call.1
= control target key start
LH: loop header
LB: loop body
LE: loop exit
PB: predicated region body
PF: predicated region fallthrough
CT: control target
= control target key end

     0   :  { %12 = vsyncpa [#allocation3], 0  ;;  %s1568_s0 = inlined_call_operand.vmem [shape: bf16[384,32], index: 0, kind: input, shape index: {}]   ;;  %s1569_s1 = inlined_call_operand.vmem [shape: bf16[32,128], index: 1, kind: input, shape index: {}]   ;;  %s1570_s2 = inlined_call_operand.vmem [shape: f32[1,128], index: 2, kind: input, shape index: {}]   ;;  %s1571_s3 = inlined_call_operand.vmem [shape: bf16[128,128], index: 3, kind: input, shape index: {}]   ;;  %s1572_s4 = inlined_call_operand.vmem [shape: f32[1,128], index: 4, kind: input, shape index: {}]   ;;  %s1573_s5 = inlined_call_operand.vmem [shape: bf16[128,128], index: 5, kind: input, shape index: {}]   ;;  %s1574_s6 = inlined_call_operand.vmem [shape: f32[1,128], index: 6, kind: input, shape index: {}]   ;;  %s1575_s7 = inlined_call_operand.hbm [shape: f32[384,128], index: 7, kind: output, shape index: {}]  }
   0x1   :  { %14 = vsyncpa [#allocation3 + $0x1], 0  ;;  %s1372_s24 = smov 0   ;;  %s1374_s25 = smov 0  }
   0x2   :  { %s1376_s26 = smov 0   ;;  %s1378_s27 = smov 0  }
   0x3 LB: > { %s1393_s28 = sadd.s32 4294967295, %s1327_s27   ;;  %s958_s29 = sadd.s32 4294967294, %s1327_s27   ;;  %s1327_s27 = sphi %s1378_s27, %s1581_s27   ;;  %s1323_s26 = sphi %s1376_s26, %s1580_s26   ;;  %s1319_s25 = sphi %s1374_s25, %s1579_s25   ;;  %s1315_s24 = sphi %s1372_s24, %s1578_s24  }
   0x4   : > { %s1397_s30 = sadd.s32 1, %s1327_s27   ;;  %s179_s8 = sadd.s32 1, %s1323_s26 }
   0x5   : > { %s176_s9 = ssub.s32 %s1327_s27, %s1397_s30  ;;  %p189_p0 = scmp.ne.s32.totalorder %s1323_s26, %s1319_s25 }
   0x6   : > { %p177_p1 = scmp.eq.s32.totalorder %s176_s9, 0  ;;  %p190_p2 = scmp.eq.s32.totalorder %s1393_s28, 2 }
   0x7   : > { %p195_p3 = scmp.ne.s32.totalorder %s1319_s25, %s1315_s24  ;;  %p196_p4 = scmp.eq.s32.totalorder %s958_s29, 2 }
   0x8   : > { %s1408_s10 = scalar_select %p177_p1, %s1323_s26, %s179_s8  }
   0x9   : > { %p1410_p5 = por %p190_p2, %p189_p0  ;;  %p1414_p6 = por %p196_p4, %p195_p3 }
   0xa   : > { %p961_p7 = scmp.ge.s32.totalorder %s1327_s27, 1  ;;  %p241_p8 = scmp.lt.s32.totalorder %s1327_s27, 4 }
   0xc   : > { %p242_p9 = pnand %p961_p7, %p241_p8 }
   0xd   : > { %v1175_v0 = vld [vmem:[%s1569_s1] sm:$0xff] (!%p242_p9)   ;;  %s963_s15 = sshll.u32 (!%p242_p9), %s1393_s28, 4  ;;  %v1176_v1 = vld [vmem:[%s1569_s1 + $0x8] sm:$0xff] (!%p242_p9)   ;;  %vm360_vm0 = vcmask (!%p242_p9), 261120   ;;  %v1187_v4 = vld [vmem:[%s1571_s3 + $0x10] sm:$0xff] (!%p242_p9)   ;;  %s270_s16 = sand.u32 (!%p242_p9), 1, %s1319_s25  }
   0xe   : > { %245 = sbr.rel (%p242_p9) target bundleno = 744 (0x2e8), region = 48  ;;  %p274_p10 = scmp.lt.s32.totalorder (!%p242_p9), %s963_s15, 47  ;;  %1050 = vmatprep.subr.bf16.mxu0 (!%p242_p9), %v1175_v0  ;;  %v1185_v2 = vld [vmem:[%s1571_s3] sm:$0xff] (!%p242_p9)   ;;  %v1186_v3 = vld [vmem:[%s1571_s3 + $0x8] sm:$0xff] (!%p242_p9)   ;;  %v1188_v13 = vld [vmem:[%s1571_s3 + $0x18] sm:$0xff] (!%p242_p9)  }
   0xf   : > { %1051 = vmatpush3.bf16.msra.mxu0 (!%p242_p9), %v1175_v0  ;;  %1070 = vmatprep.subr.bf16.mxu1 (!%p242_p9), %v1185_v2  ;;  %v1189_v14 = vld [vmem:[%s1571_s3 + $0x20] sm:$0xff] (!%p242_p9)   ;;  %v1190_v15 = vld [vmem:[%s1571_s3 + $0x28] sm:$0xff] (!%p242_p9)   ;;  %v1191_v16 = vld [vmem:[%s1571_s3 + $0x30] sm:$0xff] (!%p242_p9)   ;;  %s962_s17 = sshll.u32 (!%p242_p9), %s270_s16, 7  ;;  %s1007_s21 = sshll.u32 (!%p242_p9), %s1393_s28, 11 }
  0x10   : > { %1052 = vmatprep.subr.bf16.mxu0 (!%p242_p9), %v1176_v1  ;;  %1071 = vmatpush3.bf16.msra.mxu1 (!%p242_p9), %v1185_v2  ;;  %v1192_v17 = vld [vmem:[%s1571_s3 + $0x38] sm:$0xff] (!%p242_p9)   ;;  %v1193_v18 = vld [vmem:[%s1573_s5] sm:$0xff] (!%p242_p9)   ;;  %v1194_v19 = vld [vmem:[%s1573_s5 + $0x8] sm:$0xff] (!%p242_p9)   ;;  %s1498_s20 = scalar_lea.vmem (!%p242_p9), [#allocation2], %s962_s17  ;;  %s1518_s8 = scalar_lea.hbm (!%p242_p9), %s1575_s7, %s1007_s21 }
  0x11   : > { %1072 = vmatprep.subr.bf16.mxu1 (!%p242_p9), %v1186_v3  ;;  %v1195_v20 = vld [vmem:[%s1573_s5 + $0x10] sm:$0xff] (!%p242_p9)   ;;  %v1196_v21 = vld [vmem:[%s1573_s5 + $0x18] sm:$0xff] (!%p242_p9)   ;;  %v965_v22 = vld [vmem:[%s1570_s2] ss:$0 sm:$0xff] (!%p242_p9)  ;;  %s1527_s28 = scalar_lea.sflag (!%p242_p9), [#allocation3], %s270_s16 }
  0x13   : > { %1053 = vmatpush3.bf16.msra.mxu0 (!%p242_p9), %v1176_v1 }
  0x14   : > { %1073 = vmatpush3.bf16.msra.mxu1 (!%p242_p9), %v1186_v3  ;;  %1102 = vmatprep.subr.bf16.mxu0 (!%p242_p9), %v1193_v18 }
  0x15   : > { %s1583_s15 = smov (!%p274_p10, %s963_s15), 47  ;;  %1074 = vmatprep.subr.bf16.mxu1 %v1187_v4 }
  0x16   : > { %s964_s22 = sshll.u32 %s1583_s15, 2 }
  0x17   : > { %s277_s13 = scalar_lea.vmem %s1568_s0, %s964_s22  ;;  %s896_s22 = sshll.u32 %s1498_s20, 4  ;;  %s1520_s22 = int_to_ptr.vmem [resolvable:$true] %s896_s22 }
  0x18   : > { %v1177_v5 = vld [vmem:[%s277_s13] sm:$0xff]   ;;  %v1178_v6 = vld [vmem:[%s277_s13 + $0x8] sm:$0xff]   ;;  %v1179_v7 = vld [vmem:[%s277_s13 + $0x10] sm:$0xff]   ;;  %1075 = vmatpush3.bf16.msra.mxu1 %v1187_v4  ;;  %s1265_s9 = scalar_lea.vmem %s1520_s22, 2048 }
  0x19   : > { %1054 = vmatprep.mubr.msk.bf16.mxu0 %vm360_vm0, %v1177_v5  ;;  %v1180_v8 = vld [vmem:[%s277_s13 + $0x18] sm:$0xff]   ;;  %v1181_v9 = vld [vmem:[%s277_s13 + $0x20] sm:$0xff]   ;;  %v1182_v10 = vld [vmem:[%s277_s13 + $0x28] sm:$0xff]   ;;  %1076 = vmatprep.subr.bf16.mxu1 %v1188_v13  ;;  %p1266_p11 = scmp.ne.s32.totalorder %s1520_s22, %s1265_s9 }
  0x1a   : > { %1055 = vmatmul.mubr.msk.bf16.vlgmr.msra.gmra.mrb[0].mxu0 %vm360_vm0, %v1178_v6  ;;  %v1183_v11 = vld [vmem:[%s277_s13 + $0x30] sm:$0xff]   ;;  %v1184_v12 = vld [vmem:[%s277_s13 + $0x38] sm:$0xff]   ;;  %s1329_s13 = smov [#allocation2]  }
  0x1b   : > { %1058 = vmatprep.mubr.msk.bf16.mxu0 %vm360_vm0, %v1179_v7  ;;  %1103 = vmatpush3.bf16.msra.mxu0 %v1193_v18  ;;  %v1200_v18 = vld [vmem:[%s1573_s5 + $0x38] sm:$0xff]   ;;  %p1267_p12 = pnand %p1266_p11, %p1410_p5  ;;  %s1269_s14 = sshll.u32 %s1329_s13, 4  ;;  %s1270_s14 = int_to_ptr.vmem [resolvable:$false] %s1269_s14 }
  0x1c   : > { %1077 = vmatpush3.bf16.msra.mxu1 %v1188_v13  ;;  %1104 = vmatprep.subr.bf16.mxu0 %v1194_v19  ;;  %s1271_s15 = scalar_lea.vmem %s1270_s14, 4096  ;;  %p1272_p0 = scmp.lt.s32.totalorder %s1520_s22, %s1270_s14 }
  0x1d   : > { %1078 = vmatprep.subr.bf16.mxu1 %v1189_v14  ;;  %p1268_p13 = pneg %p1267_p12  ;;  %p1273_p1 = scmp.lt.s32.totalorder %s1271_s15, %s1265_s9 }
  0x1f   : > { %1105 = vmatpush3.bf16.msra.mxu0 %v1194_v19  ;;  %v984_v19 = vld [vmem:[%s1572_s4] ss:$0 sm:$0xff]  ;;  %p1274_p2 = por %p1273_p1, %p1272_p0 }
  0x20   : > { %1079 = vmatpush3.bf16.msra.mxu1 %v1189_v14  ;;  %1106 = vmatprep.subr.bf16.mxu0 %v1195_v20 }
  0x21   : > { %1080 = vmatprep.subr.bf16.mxu1 %v1190_v15  ;;  %p1275_p3 = pnand %p1274_p2, %p1268_p13 }
  0x22   : > { %1059 = vmatmul.mubr.msk.bf16.gmra.mrb[4].mxu0 %vm360_vm0, %v1180_v8 }
  0x23   : > { %1062 = vmatprep.mubr.msk.bf16.mxu0 %vm360_vm0, %v1181_v9  ;;  %1107 = vmatpush3.bf16.msra.mxu0 %v1195_v20 }
  0x24   : > { %1081 = vmatpush3.bf16.msra.mxu1 %v1190_v15  ;;  %1108 = vmatprep.subr.bf16.mxu0 %v1196_v21  ;;  %v1197_v15 = vld [vmem:[%s1573_s5 + $0x20] sm:$0xff]  }
  0x25   : > { %1082 = vmatprep.subr.bf16.mxu1 %v1191_v16 }
  0x27   : > { %1109 = vmatpush3.bf16.msra.mxu0 %v1196_v21 }
  0x28   : > { %1083 = vmatpush3.bf16.msra.mxu1 %v1191_v16  ;;  %1110 = vmatprep.subr.bf16.mxu0 %v1197_v15  ;;  %v1198_v16 = vld [vmem:[%s1573_s5 + $0x28] sm:$0xff]  }
  0x29   : > { %1084 = vmatprep.subr.bf16.mxu1 %v1192_v17 }
  0x2a   : > { %1063 = vmatmul.mubr.msk.bf16.gmra.mrb[8].mxu0 %vm360_vm0, %v1182_v10 }
  0x2b   : > { %1066 = vmatprep.mubr.msk.bf16.mxu0 %vm360_vm0, %v1183_v11  ;;  %1111 = vmatpush3.bf16.msra.mxu0 %v1197_v15 }
  0x2c   : > { %1085 = vmatpush3.bf16.msra.mxu1 %v1192_v17  ;;  %1112 = vmatprep.subr.bf16.mxu0 %v1198_v16  ;;  %v1199_v17 = vld [vmem:[%s1573_s5 + $0x30] sm:$0xff]  }
  0x2f   : > { %1113 = vmatpush3.bf16.msra.mxu0 %v1198_v16 }
  0x30   : > { %1114 = vmatprep.subr.bf16.mxu0 %v1199_v17 }
  0x32   : > { %1067 = vmatmul.mubr.msk.bf16.gmra.mrb[12].mxu0 %vm360_vm0, %v1184_v12 }
  0x33   : > { %1115 = vmatpush3.bf16.msra.mxu0 %v1199_v17 }
  0x34   : > { %1116 = vmatprep.subr.bf16.mxu0 %v1200_v18 }
  0x37   : > { %1117 = vmatpush3.bf16.msra.mxu0 %v1200_v18 }
  0xed   : > { %v1056_v23 = vpop.f32.mrb[0].mxu0 }
  0xee   : > { %v428_v24 = vadd.f32 %v1056_v23, %v965_v22  ;;  %v419_v25 = vpop.f32.mrb[1].mxu0 }
  0xef   : > { %v420_v26 = vadd.f32 %v965_v22, %v419_v25  ;;  %v1057_v27 = vpop.f32.mrb[2].mxu0 }
  0xf0   : > { %1201 = vtanh.f32 %v428_v24  ;;  %v431_v28 = vadd.f32 %v1057_v27, %v965_v22  ;;  %v422_v29 = vpop.f32.mrb[3].mxu0 }
  0xf1   : > { %1203 = vtanh.f32 %v420_v26  ;;  %v423_v30 = vadd.f32 %v965_v22, %v422_v29 }
  0xf2   : > { %1205 = vtanh.f32 %v431_v28 }
  0xf3   : > { %1207 = vtanh.f32 %v423_v30 }
  0xf5   : > { %v1060_v31 = vpop.f32.mrb[4].mxu0 }
  0xf6   : > { %v444_v32 = vadd.f32 %v1060_v31, %v965_v22  ;;  %v435_v33 = vpop.f32.mrb[5].mxu0 }
  0xf7   : > { %v436_v34 = vadd.f32 %v965_v22, %v435_v33  ;;  %v1061_v35 = vpop.f32.mrb[6].mxu0 }
  0xf8   : > { %1209 = vtanh.f32 %v444_v32  ;;  %v447_v36 = vadd.f32 %v1061_v35, %v965_v22  ;;  %v438_v37 = vpop.f32.mrb[7].mxu0 }
  0xf9   : > { %1211 = vtanh.f32 %v436_v34  ;;  %v439_v38 = vadd.f32 %v965_v22, %v438_v37 }
  0xfa   : > { %v1202_v39 = vpop.eup %1201  ;;  %1213 = vtanh.f32 %v447_v36 }
  0xfb   : > { %v1204_v40 = vpop.eup %1203  ;;  %1215 = vtanh.f32 %v439_v38 }
  0xfc   : > { %v1206_v41 = vpop.eup %1205 }
  0xfd   : > { %v1208_v42 = vpop.eup %1207  ;;  %v1064_v43 = vpop.f32.mrb[8].mxu0  ;;  %v499_v44 = vpack.c.bf16 %v1206_v41, %v1202_v39 }
  0xfe   : > { %v460_v45 = vadd.f32 %v1064_v43, %v965_v22  ;;  %v451_v46 = vpop.f32.mrb[9].mxu0  ;;  %v498_v47 = vpack.c.bf16 %v1208_v42, %v1204_v40 }
  0xff   : > { %v452_v48 = vadd.f32 %v965_v22, %v451_v46  ;;  %v1065_v49 = vpop.f32.mrb[10].mxu0 }
 0x100   : > { %1217 = vtanh.f32 %v460_v45  ;;  %v463_v50 = vadd.f32 %v1065_v49, %v965_v22  ;;  %v454_v51 = vpop.f32.mrb[11].mxu0  ;;  %1086 = vmatprep.mubr.bf16.mxu1 %v498_v47 }
 0x101   : > { %1219 = vtanh.f32 %v452_v48  ;;  %v455_v52 = vadd.f32 %v965_v22, %v454_v51  ;;  %1087 = vmatmul.mubr.bf16.vlgmr.msra.gmra.mrb[0].mxu1 %v499_v44 }
 0x102   : > { %v1210_v53 = vpop.eup %1209  ;;  %1221 = vtanh.f32 %v463_v50 }
 0x103   : > { %v1212_v54 = vpop.eup %1211  ;;  %1223 = vtanh.f32 %v455_v52 }
 0x104   : > { %v1214_v55 = vpop.eup %1213 }
 0x105   : > { %v1216_v56 = vpop.eup %1215  ;;  %v1068_v57 = vpop.f32.mrb[12].mxu0  ;;  %v501_v58 = vpack.c.bf16 %v1214_v55, %v1210_v53 }
 0x106   : > { %v476_v59 = vadd.f32 %v1068_v57, %v965_v22  ;;  %v467_v60 = vpop.f32.mrb[13].mxu0  ;;  %v500_v61 = vpack.c.bf16 %v1216_v56, %v1212_v54 }
 0x107   : > { %v468_v62 = vadd.f32 %v965_v22, %v467_v60  ;;  %v1069_v63 = vpop.f32.mrb[14].mxu0 }
 0x108   : > { %1225 = vtanh.f32 %v476_v59  ;;  %v479_v0 = vadd.f32 %v1069_v63, %v965_v22  ;;  %v470_v1 = vpop.f32.mrb[15].mxu0  ;;  %1090 = vmatprep.mubr.bf16.mxu1 %v500_v61 }
 0x109   : > { %1227 = vtanh.f32 %v468_v62  ;;  %v471_v2 = vadd.f32 %v965_v22, %v470_v1  ;;  %1091 = vmatmul.mubr.bf16.gmra.mrb[4].mxu1 %v501_v58 }
 0x10a   : > { %v1218_v3 = vpop.eup %1217  ;;  %1229 = vtanh.f32 %v479_v0 }
 0x10b   : > { %v1220_v4 = vpop.eup %1219  ;;  %1231 = vtanh.f32 %v471_v2 }
 0x10c   : > { %v1222_v5 = vpop.eup %1221 }
 0x10d   : > { %v1224_v6 = vpop.eup %1223  ;;  %v503_v7 = vpack.c.bf16 %v1222_v5, %v1218_v3 }
 0x10e   : > { %v502_v8 = vpack.c.bf16 %v1224_v6, %v1220_v4 }
 0x110   : > { %1094 = vmatprep.mubr.bf16.mxu1 %v502_v8 }
 0x111   : > { %1095 = vmatmul.mubr.bf16.gmra.mrb[8].mxu1 %v503_v7 }
 0x112   : > { %v1226_v9 = vpop.eup %1225 }
 0x113   : > { %v1228_v10 = vpop.eup %1227 }
 0x114   : > { %v1230_v11 = vpop.eup %1229 }
 0x115   : > { %v1232_v12 = vpop.eup %1231  ;;  %v505_v13 = vpack.c.bf16 %v1230_v11, %v1226_v9 }
 0x116   : > { %v504_v14 = vpack.c.bf16 %v1232_v12, %v1228_v10  ;;  %v993_v12 = vld [vmem:[%s1574_s6] ss:$0 sm:$0xff] }
 0x118   : > { %1098 = vmatprep.mubr.bf16.mxu1 %v504_v14 }
 0x119   : > { %1099 = vmatmul.mubr.bf16.gmra.mrb[12].mxu1 %v505_v13 }
 0x1d4   : > { %v1088_v20 = vpop.f32.mrb[0].mxu1 }
 0x1d5   : > { %v620_v21 = vadd.f32 %v1088_v20, %v984_v19  ;;  %v611_v22 = vpop.f32.mrb[1].mxu1 }
 0x1d6   : > { %v612_v23 = vadd.f32 %v984_v19, %v611_v22  ;;  %v1089_v24 = vpop.f32.mrb[2].mxu1 }
 0x1d7   : > { %1233 = vtanh.f32 %v620_v21  ;;  %v623_v25 = vadd.f32 %v1089_v24, %v984_v19  ;;  %v614_v26 = vpop.f32.mrb[3].mxu1 }
 0x1d8   : > { %1235 = vtanh.f32 %v612_v23  ;;  %v615_v27 = vadd.f32 %v984_v19, %v614_v26 }
 0x1d9   : > { %1237 = vtanh.f32 %v623_v25 }
 0x1da   : > { %1239 = vtanh.f32 %v615_v27 }
 0x1dc   : > { %v1092_v28 = vpop.f32.mrb[4].mxu1 }
 0x1dd   : > { %v636_v29 = vadd.f32 %v1092_v28, %v984_v19  ;;  %v627_v30 = vpop.f32.mrb[5].mxu1 }
 0x1de   : > { %v628_v31 = vadd.f32 %v984_v19, %v627_v30  ;;  %v1093_v32 = vpop.f32.mrb[6].mxu1 }
 0x1df   : > { %1241 = vtanh.f32 %v636_v29  ;;  %v639_v33 = vadd.f32 %v1093_v32, %v984_v19  ;;  %v630_v34 = vpop.f32.mrb[7].mxu1 }
 0x1e0   : > { %1243 = vtanh.f32 %v628_v31  ;;  %v631_v35 = vadd.f32 %v984_v19, %v630_v34 }
 0x1e1   : > { %v1234_v36 = vpop.eup %1233  ;;  %1245 = vtanh.f32 %v639_v33 }
 0x1e2   : > { %v1236_v37 = vpop.eup %1235  ;;  %1247 = vtanh.f32 %v631_v35 }
 0x1e3   : > { %v1238_v38 = vpop.eup %1237 }
 0x1e4   : > { %v1240_v39 = vpop.eup %1239  ;;  %v1096_v40 = vpop.f32.mrb[8].mxu1  ;;  %v691_v41 = vpack.c.bf16 %v1238_v38, %v1234_v36 }
 0x1e5   : > { %v652_v42 = vadd.f32 %v1096_v40, %v984_v19  ;;  %v643_v43 = vpop.f32.mrb[9].mxu1  ;;  %v690_v44 = vpack.c.bf16 %v1240_v39, %v1236_v37 }
 0x1e6   : > { %v644_v45 = vadd.f32 %v984_v19, %v643_v43  ;;  %v1097_v46 = vpop.f32.mrb[10].mxu1 }
 0x1e7   : > { %1249 = vtanh.f32 %v652_v42  ;;  %v655_v47 = vadd.f32 %v1097_v46, %v984_v19  ;;  %v646_v48 = vpop.f32.mrb[11].mxu1  ;;  %1118 = vmatprep.mubr.bf16.mxu0 %v690_v44 }
 0x1e8   : > { %1251 = vtanh.f32 %v644_v45  ;;  %v647_v49 = vadd.f32 %v984_v19, %v646_v48  ;;  %1119 = vmatmul.mubr.bf16.vlgmr.msra.gmra.mrb[16].mxu0 %v691_v41 }
 0x1e9   : > { %v1242_v50 = vpop.eup %1241  ;;  %1253 = vtanh.f32 %v655_v47 }
 0x1ea   : > { %v1244_v51 = vpop.eup %1243  ;;  %1255 = vtanh.f32 %v647_v49 }
 0x1eb   : > { %v1246_v52 = vpop.eup %1245 }
 0x1ec   : > { %v1248_v53 = vpop.eup %1247  ;;  %v1100_v54 = vpop.f32.mrb[12].mxu1  ;;  %v693_v55 = vpack.c.bf16 %v1246_v52, %v1242_v50 }
 0x1ed   : > { %v668_v56 = vadd.f32 %v1100_v54, %v984_v19  ;;  %v659_v57 = vpop.f32.mrb[13].mxu1  ;;  %v692_v58 = vpack.c.bf16 %v1248_v53, %v1244_v51 }
 0x1ee   : > { %v660_v59 = vadd.f32 %v984_v19, %v659_v57  ;;  %v1101_v60 = vpop.f32.mrb[14].mxu1 }
 0x1ef   : > { %1257 = vtanh.f32 %v668_v56  ;;  %v671_v61 = vadd.f32 %v1101_v60, %v984_v19  ;;  %v662_v62 = vpop.f32.mrb[15].mxu1  ;;  %1122 = vmatprep.mubr.bf16.mxu0 %v692_v58 }
 0x1f0   : > { %1259 = vtanh.f32 %v660_v59  ;;  %v663_v63 = vadd.f32 %v984_v19, %v662_v62  ;;  %1123 = vmatmul.mubr.bf16.gmra.mrb[20].mxu0 %v693_v55 }
 0x1f1   : > { %v1250_v0 = vpop.eup %1249  ;;  %1261 = vtanh.f32 %v671_v61 }
 0x1f2   : > { %v1252_v1 = vpop.eup %1251  ;;  %1263 = vtanh.f32 %v663_v63 }
 0x1f3   : > { %v1254_v2 = vpop.eup %1253 }
 0x1f4   : > { %v1256_v3 = vpop.eup %1255  ;;  %v695_v4 = vpack.c.bf16 %v1254_v2, %v1250_v0 }
 0x1f5   : > { %v694_v5 = vpack.c.bf16 %v1256_v3, %v1252_v1 }
 0x1f7   : > { %1126 = vmatprep.mubr.bf16.mxu0 %v694_v5 }
 0x1f8   : > { %1127 = vmatmul.mubr.bf16.gmra.mrb[24].mxu0 %v695_v4 }
 0x1f9   : > { %v1258_v6 = vpop.eup %1257 }
 0x1fa   : > { %v1260_v7 = vpop.eup %1259 }
 0x1fb   : > { %v1262_v8 = vpop.eup %1261 }
 0x1fc   : > { %v1264_v9 = vpop.eup %1263  ;;  %v697_v10 = vpack.c.bf16 %v1262_v8, %v1258_v6 }
 0x1fd   : > { %v696_v11 = vpack.c.bf16 %v1264_v9, %v1260_v7 }
 0x1ff   : > { %1130 = vmatprep.mubr.bf16.mxu0 %v696_v11 }
 0x200   : > { %1131 = vmatmul.mubr.bf16.gmra.mrb[28].mxu0 %v697_v10 }
 0x2bb   : > { %v1120_v13 = vpop.f32.mrb[16].mxu0 }
 0x2bc   : > { %v812_v14 = vadd.f32 %v1120_v13, %v993_v12  ;;  %v803_v15 = vpop.f32.mrb[17].mxu0 }
 0x2bd   : > { %v804_v16 = vadd.f32 %v993_v12, %v803_v15  ;;  %v1121_v17 = vpop.f32.mrb[18].mxu0 }
 0x2be   : > { %868 = vst [vmem:[%s1498_s20 + $0x10] sm:$0xff] %v812_v14  ;;  %v815_v18 = vadd.f32 %v1121_v17, %v993_v12  ;;  %v806_v19 = vpop.f32.mrb[19].mxu0 }
 0x2bf   : > { %866 = vst [vmem:[%s1498_s20] sm:$0xff] %v804_v16  ;;  %v807_v20 = vadd.f32 %v993_v12, %v806_v19 }
 0x2c0   : > { %869 = vst [vmem:[%s1498_s20 + $0x18] sm:$0xff] %v815_v18 }
 0x2c1   : > { %867 = vst [vmem:[%s1498_s20 + $0x8] sm:$0xff] %v807_v20 }
 0x2c3   : > { %v1124_v21 = vpop.f32.mrb[20].mxu0 }
 0x2c4   : > { %v828_v22 = vadd.f32 %v1124_v21, %v993_v12  ;;  %v819_v23 = vpop.f32.mrb[21].mxu0 }
 0x2c5   : > { %v820_v24 = vadd.f32 %v993_v12, %v819_v23  ;;  %v1125_v25 = vpop.f32.mrb[22].mxu0 }
 0x2c6   : > { %872 = vst [vmem:[%s1498_s20 + $0x30] sm:$0xff] %v828_v22  ;;  %v831_v26 = vadd.f32 %v1125_v25, %v993_v12  ;;  %v822_v27 = vpop.f32.mrb[23].mxu0 }
 0x2c7   : > { %870 = vst [vmem:[%s1498_s20 + $0x20] sm:$0xff] %v820_v24  ;;  %v823_v28 = vadd.f32 %v993_v12, %v822_v27 }
 0x2c8   : > { %873 = vst [vmem:[%s1498_s20 + $0x38] sm:$0xff] %v831_v26 }
 0x2c9   : > { %871 = vst [vmem:[%s1498_s20 + $0x28] sm:$0xff] %v823_v28 }
 0x2cb   : > { %v1128_v29 = vpop.f32.mrb[24].mxu0 }
 0x2cc   : > { %v844_v30 = vadd.f32 %v1128_v29, %v993_v12  ;;  %v835_v31 = vpop.f32.mrb[25].mxu0 }
 0x2cd   : > { %v836_v32 = vadd.f32 %v993_v12, %v835_v31  ;;  %v1129_v33 = vpop.f32.mrb[26].mxu0 }
 0x2ce   : > { %876 = vst [vmem:[%s1498_s20 + $0x50] sm:$0xff] %v844_v30  ;;  %v847_v34 = vadd.f32 %v1129_v33, %v993_v12  ;;  %v838_v35 = vpop.f32.mrb[27].mxu0 }
 0x2cf   : > { %874 = vst [vmem:[%s1498_s20 + $0x40] sm:$0xff] %v836_v32  ;;  %v839_v36 = vadd.f32 %v993_v12, %v838_v35 }
 0x2d0   : > { %877 = vst [vmem:[%s1498_s20 + $0x58] sm:$0xff] %v847_v34 }
 0x2d1   : > { %875 = vst [vmem:[%s1498_s20 + $0x48] sm:$0xff] %v839_v36 }
 0x2d3   : > { %v1132_v37 = vpop.f32.mrb[28].mxu0 }
 0x2d4   : > { %v860_v38 = vadd.f32 %v1132_v37, %v993_v12  ;;  %v851_v39 = vpop.f32.mrb[29].mxu0 }
 0x2d5   : > { %v852_v40 = vadd.f32 %v993_v12, %v851_v39  ;;  %v1133_v41 = vpop.f32.mrb[30].mxu0 }
 0x2d6   : > { %880 = vst [vmem:[%s1498_s20 + $0x70] sm:$0xff] %v860_v38  ;;  %v863_v42 = vadd.f32 %v1133_v41, %v993_v12  ;;  %v854_v43 = vpop.f32.mrb[31].mxu0 }
 0x2d7   : > { %878 = vst [vmem:[%s1498_s20 + $0x60] sm:$0xff] %v852_v40  ;;  %v855_v44 = vadd.f32 %v993_v12, %v854_v43 }
 0x2d8   : > { %881 = vst [vmem:[%s1498_s20 + $0x78] sm:$0xff] %v863_v42 }
 0x2d9   : > { %879 = vst [vmem:[%s1498_s20 + $0x68] sm:$0xff] %v855_v44 }
 0x2da   : > { %1278 = shalt.err (!%p1275_p3)
}
 0x2db   : > { %s1279_s16 = scalar_lea.hbm %s1518_s8, 2048  ;;  %s1283_s19 = scalar_lea.hbm %s1575_s7, 6144 }
 0x2dc   : > { %p1280_p4 = scmp.ne.s32.totalorder %s1518_s8, %s1279_s16  ;;  %p1284_p9 = scmp.lt.u32.totalorder %s1518_s8, %s1575_s7 }
 0x2dd   : > { %p1285_p10 = scmp.lt.u32.totalorder %s1283_s19, %s1279_s16  ;;  %p1287_p12 = scmp.lt.u32.totalorder %s1279_s16, %s1518_s8 }
 0x2de   : > { %p1281_p7 = pnand %p1280_p4, %p1410_p5 }
 0x2df   : > { %p1286_p11 = por %p1285_p10, %p1284_p9 }
 0x2e0   : > { %p1282_p8 = pneg %p1281_p7 }
 0x2e1   : > { %p1288_p13 = por %p1287_p12, %p1286_p11 }
 0x2e3   : > { %p1289_p0 = pnand %p1288_p13, %p1282_p8 }
 0x2e5   : > { %1292 = shalt.err (!%p1289_p0)
}
 0x2e6   : > { %s1330_s23 = smov 128   ;;  %s1331_s29 = smov 8  }
 0x2e7   : > { %1134 = dma.vmem_to_hbm [thread:$0]  (%p1410_p5), %s1520_s22, 2048, %s1518_s8, %s1527_s28, %s1330_s23, %s1330_s23, %s1331_s29  }
 0x2e8 PF: > { %p1140_p1 = scmp.ge.s32.totalorder %s1327_s27, 2  ;;  %s911_s9 = sand.u32 1, %s1315_s24  }
 0x2e9   : > { %s912_s13 = scalar_lea.sflag [#allocation3], %s911_s9 }
 0x2ea   : > { %p1137_p2 = pnand %p1140_p1, %p1414_p6 }
 0x2ec   : > { %1310 = dma.done.wait (!%p1137_p2), %s912_s13, 2048  }
 0x2ed   : > { %1312 = vsyncadd (!%p1137_p2), %s912_s13, 4294965248  ;;  %p17_p3 = scmp.ge.s32.totalorder %s1397_s30, 5   ;;  %s1578_s24 = smov %s1319_s25 }
 0x2ee   : > { %s1579_s25 = smov %s1323_s26  ;;  %s1580_s26 = smov %s1408_s10 }
 0x2ef   : > { %s1581_s27 = smov %s1397_s30  ;;  %19 = sbr.rel (!%p17_p3) target bundleno = 3 (0x3), region = 83 }
 0x2f6   :  { %917 = vsyncpa [#allocation3], 1 }
 0x2f7   :  { %919 = vsyncpa [#allocation3 + $0x1], 1 }

</bundles_post_ra>
